<compile_context>
chip_gen: v6e
topology: v6e:2x2x1
jax: 0.10.0
libtpu: 0.0.40
codegen_flags: <defaults>
</compile_context>

<pallas_src>
import functools

import jax
import jax.numpy as jnp
from jax import lax
from jax.experimental import pallas as pl
from jax.experimental.pallas import tpu as pltpu

MAX_BLOCK_ELEMS = 512 * 1024          # ~2 MiB f32 per array per grid step
VMEM_LIMIT_BYTES = 32 * 1024 * 1024   # safe on v5e/v6e/v7x (live set ~16 MiB)


def _cdiv(a, b):
    return -(-a // b)


def _round_up(a, b):
    return _cdiv(a, b) * b


def _pick_cols(n):
    """Widest lane-dense column count that divides n (else 512 with padding)."""
    for c in (512, 256, 128):
        if n % c == 0:
            return c
    return 512


def _focal_loss_elementwise(x, t, alpha, gamma):
    """Elementwise focal loss on f32 vregs (the hot path)."""
    # NOTE: gamma == 0 divides by zero (inf/nan), same as the PyTorch module.
    z = gamma * (x * (2.0 * t - 1.0))
    # numerically stable logsigmoid(z) = min(z, 0) - log1p(exp(-|z|))
    log_sig = jnp.minimum(z, 0.0) - jnp.log1p(jnp.exp(-jnp.abs(z)))
    loss = log_sig * (-1.0 / gamma)  # hoisted constant multiply (VPU)
    if alpha >= 0:
        alpha_t = alpha * t + (1.0 - alpha) * (1.0 - t)
        loss = loss * alpha_t
    return loss


def _valid_mask(shape, tile_r, full_rows, rem_cols):
    """True for elements whose flat index < n (static full_rows/rem_cols)."""
    row0 = pl.program_id(0) * tile_r
    gr = row0 + lax.broadcasted_iota(jnp.int32, shape, 0)
    mask = gr < full_rows
    if rem_cols:
        col = lax.broadcasted_iota(jnp.int32, shape, 1)
        mask = mask | ((gr == full_rows) & (col < rem_cols))
    return mask


def _focal_none_kernel(x_ref, t_ref, o_ref, *, alpha, gamma):
    x = x_ref[...].astype(jnp.float32)
    t = t_ref[...].astype(jnp.float32)
    o_ref[...] = _focal_loss_elementwise(x, t, alpha, gamma).astype(o_ref.dtype)


def _focal_partial_kernel(x_ref, t_ref, o_ref, *, alpha, gamma,
                          tile_r, full_rows, rem_cols, needs_mask):
    """Per-block partial sums folded to an (8, cols) tile with VPU adds."""
    x = x_ref[...].astype(jnp.float32)
    t = t_ref[...].astype(jnp.float32)
    loss = _focal_loss_elementwise(x, t, alpha, gamma)
    if needs_mask:
        # Select (not multiply): garbage/NaN in out-of-bounds lanes cannot leak.
        mask = _valid_mask(loss.shape, tile_r, full_rows, rem_cols)
        loss = jnp.where(mask, loss, 0.0)
    tr, cols = loss.shape
    # Layout-preserving split of the row dim: sum over axis 0 is vreg-wise
    # VPU adds only (no XLU cross-lane reduce per step).
    o_ref[...] = loss.reshape(tr // 8, 8, cols).sum(axis=0)


def binary_focal_loss(inputs, targets, *, alpha=-1, gamma=1, reduction="none"):
    """JAX/Pallas equivalent of BinaryFocalLoss(alpha, gamma, reduction)."""
    assert inputs.shape == targets.shape
    orig_shape = inputs.shape
    orig_dtype = inputs.dtype
    alpha = float(alpha)
    gamma = float(gamma)
    n = inputs.size

    # Keep targets narrow in HBM (in-kernel cast to f32); bools go to uint8.
    if targets.dtype == jnp.bool_:
        targets = targets.astype(jnp.uint8)

    cols = _pick_cols(n)
    rows = _cdiv(n, cols)
    padded = rows * cols != n                      # only when n % 128 != 0
    tile_r = min(MAX_BLOCK_ELEMS // cols, _round_up(rows, 8))
    num_blocks = _cdiv(rows, tile_r)
    grid = (num_blocks,)

    x2d = inputs.reshape(-1)
    t2d = targets.reshape(-1)
    if padded:
        # Rare path: complete the last 2-D row with zeros.  Padded elements
        # are masked in-kernel (reductions) / sliced off ('none').
        pad = rows * cols - n
        x2d = jnp.pad(x2d, (0, pad))
        t2d = jnp.pad(t2d, (0, pad))
    x2d = x2d.reshape(rows, cols)
    t2d = t2d.reshape(rows, cols)

    in_spec = pl.BlockSpec((tile_r, cols), lambda i: (i, 0))
    compiler_params = pltpu.CompilerParams(
        # TODO(synk): on v7x, verify in xprof that the 'parallel' axis shards
        # across both TensorCores; if not, switch to a CORE_PARALLEL split.
        dimension_semantics=("parallel",),
        vmem_limit_bytes=VMEM_LIMIT_BYTES,
    )
    x_bytes = n * inputs.dtype.itemsize
    t_bytes = n * targets.dtype.itemsize

    if reduction not in ("mean", "sum"):
        # The PyTorch module returns the unreduced loss for any other value.
        cost = pl.CostEstimate(
            flops=12 * n, transcendentals=2 * n,
            bytes_accessed=x_bytes + t_bytes + n * jnp.dtype(orig_dtype).itemsize)
        out = pl.pallas_call(
            functools.partial(_focal_none_kernel, alpha=alpha, gamma=gamma),
            out_shape=jax.ShapeDtypeStruct((rows, cols), orig_dtype),
            grid_spec=pltpu.PrefetchScalarGridSpec(
                num_scalar_prefetch=0,
                grid=grid,
                in_specs=[in_spec, in_spec],
                out_specs=pl.BlockSpec((tile_r, cols), lambda i: (i, 0)),
            ),
            compiler_params=compiler_params,
            cost_estimate=cost,
        )(x2d, t2d)
        if padded:
            return out.reshape(-1)[:n].reshape(orig_shape)
        return out.reshape(orig_shape)

    needs_mask = padded or (rows % tile_r != 0)
    cost = pl.CostEstimate(
        flops=12 * n, transcendentals=2 * n,
        bytes_accessed=x_bytes + t_bytes + num_blocks * 8 * cols * 4)
    partials = pl.pallas_call(
        functools.partial(
            _focal_partial_kernel, alpha=alpha, gamma=gamma, tile_r=tile_r,
            full_rows=n // cols, rem_cols=n % cols, needs_mask=needs_mask),
        out_shape=jax.ShapeDtypeStruct((num_blocks * 8, cols), jnp.float32),
        grid_spec=pltpu.PrefetchScalarGridSpec(
            num_scalar_prefetch=0,
            grid=grid,
            in_specs=[in_spec, in_spec],
            out_specs=pl.BlockSpec((8, cols), lambda i: (i, 0)),
        ),
        compiler_params=compiler_params,
        cost_estimate=cost,
    )(x2d, t2d)

    total = jnp.sum(partials, dtype=jnp.float32)
    if reduction == "mean":
        total = total / float(n)
    return total.astype(orig_dtype)


def _reference(inputs, targets, alpha=-1, gamma=1, reduction="none"):
    gamma = float(gamma)
    t = targets.astype(jnp.float32)
    x = inputs.astype(jnp.float32)
    z = gamma * (x * (2.0 * t - 1.0))
    loss = -jax.nn.log_sigmoid(z) / gamma
    if alpha >= 0:
        loss = loss * (alpha * t + (1 - alpha) * (1 - t))
    if reduction == "mean":
        loss = loss.mean()
    elif reduction == "sum":
        loss = loss.sum()
    return loss


if __name__ == "__main__":
    key = jax.random.PRNGKey(0)
    kx, kt = jax.random.split(key)

    # Default module config: alpha=-1, gamma=1, reduction='none'
    B, C, H, W = 2, 4, 16, 16
    x = jax.random.normal(kx, (B, C, H, W), dtype=jnp.float32)
    targets = jax.random.bernoulli(kt, 0.5, (B, C, H, W)).astype(jnp.float32)

    out = jax.block_until_ready(
        binary_focal_loss(x, targets, alpha=-1, gamma=1, reduction="none"))
    ref = _reference(x, targets, alpha=-1, gamma=1, reduction="none")
    assert out.shape == (B, C, H, W)
    assert jnp.allclose(out, ref, atol=1e-5, rtol=1e-5)

    # In-kernel (per-block partial) reduction paths.
    out_mean = jax.block_until_ready(
        binary_focal_loss(x, targets, alpha=0.25, gamma=2, reduction="mean"))
    ref_mean = _reference(x, targets, alpha=0.25, gamma=2, reduction="mean")
    assert jnp.allclose(out_mean, ref_mean, atol=1e-5, rtol=1e-5)

    out_sum = jax.block_until_ready(
        binary_focal_loss(x, targets, alpha=-1, gamma=1, reduction="sum"))
    ref_sum = _reference(x, targets, alpha=-1, gamma=1, reduction="sum")
    assert jnp.allclose(out_sum, ref_sum, atol=1e-3, rtol=1e-5)

    # Element count not a multiple of 128 exercises the (rare) padding path.
    x_odd = jax.random.normal(kx, (3, 5, 7, 9), dtype=jnp.float32)
    t_odd = jax.random.bernoulli(kt, 0.5, (3, 5, 7, 9)).astype(jnp.float32)
    out_odd = jax.block_until_ready(
        binary_focal_loss(x_odd, t_odd, alpha=0.5, gamma=1, reduction="mean"))
    ref_odd = _reference(x_odd, t_odd, alpha=0.5, gamma=1, reduction="mean")
    assert jnp.allclose(out_odd, ref_odd, atol=1e-5, rtol=1e-5)

    # Multi-block grid with a ragged (non-multiple-of-tile) last block and no
    # wrapper-side padding (rows = 2304, tile = 1024 -> 3 blocks, last partial).
    xb = jax.random.normal(kx, (2, 3, 384, 512), dtype=jnp.float32)
    tb = jax.random.bernoulli(kt, 0.5, (2, 3, 384, 512)).astype(jnp.float32)
    out_b_none = jax.block_until_ready(
        binary_focal_loss(xb, tb, alpha=0.25, gamma=2, reduction="none"))
    ref_b_none = _reference(xb, tb, alpha=0.25, gamma=2, reduction="none")
    assert jnp.allclose(out_b_none, ref_b_none, atol=1e-5, rtol=1e-5)
    out_b_sum = jax.block_until_ready(
        binary_focal_loss(xb, tb, alpha=0.25, gamma=2, reduction="sum"))
    ref_b_sum = _reference(xb, tb, alpha=0.25, gamma=2, reduction="sum")
    assert jnp.allclose(out_b_sum, ref_b_sum, atol=1e-1, rtol=1e-4)

    print("KERNEL_OK")
</pallas_src>

<mosaic_0001>
module attributes {stable_mosaic.version = 11 : i64} {
  func.func @_focal_none_kernel(%arg0: i32, %arg1: memref<8x512xf32, #tpu.memory_space<vmem>>, %arg2: memref<8x512xf32, #tpu.memory_space<vmem>>, %arg3: memref<8x512xf32, #tpu.memory_space<vmem>>) attributes {dimension_semantics = [#tpu.dimension_semantics<parallel>], iteration_bounds = array<i64: 1>, scalar_prefetch = 0 : i64, scratch_operands = 0 : i64, tpu.core_type = #tpu.core_type<tc>, window_params = [{transform_indices = @transform_0, window_bounds = array<i64: 8, 512>}, {transform_indices = @transform_1, window_bounds = array<i64: 8, 512>}, {transform_indices = @transform_2, window_bounds = array<i64: 8, 512>}]} {
    %c0 = arith.constant 0 : index
    %c0_0 = arith.constant 0 : index
    %0 = vector.load %arg1[%c0, %c0_0] : memref<8x512xf32, #tpu.memory_space<vmem>>, vector<8x512xf32>
    %c0_1 = arith.constant 0 : index
    %c0_2 = arith.constant 0 : index
    %1 = vector.load %arg2[%c0_1, %c0_2] : memref<8x512xf32, #tpu.memory_space<vmem>>, vector<8x512xf32>
    %cst = arith.constant 2.000000e+00 : f32
    %2 = vector.broadcast %cst : f32 to vector<8x512xf32>
    %3 = arith.mulf %2, %1 : vector<8x512xf32>
    %cst_3 = arith.constant 1.000000e+00 : f32
    %4 = vector.broadcast %cst_3 : f32 to vector<8x512xf32>
    %5 = arith.subf %3, %4 : vector<8x512xf32>
    %6 = arith.mulf %0, %5 : vector<8x512xf32>
    %cst_4 = arith.constant 1.000000e+00 : f32
    %7 = vector.broadcast %cst_4 : f32 to vector<8x512xf32>
    %8 = arith.mulf %7, %6 : vector<8x512xf32>
    %cst_5 = arith.constant 0.000000e+00 : f32
    %9 = vector.broadcast %cst_5 : f32 to vector<8x512xf32>
    %10 = arith.minimumf %8, %9 : vector<8x512xf32>
    %11 = math.absf %8 : vector<8x512xf32>
    %cst_6 = arith.constant 0.000000e+00 : f32
    %12 = vector.broadcast %cst_6 : f32 to vector<8x512xf32>
    %13 = arith.subf %12, %11 : vector<8x512xf32>
    %14 = math.exp %13 : vector<8x512xf32>
    %15 = math.log1p %14 : vector<8x512xf32>
    %16 = arith.subf %10, %15 : vector<8x512xf32>
    %cst_7 = arith.constant -1.000000e+00 : f32
    %17 = vector.broadcast %cst_7 : f32 to vector<8x512xf32>
    %18 = arith.mulf %16, %17 : vector<8x512xf32>
    %c0_8 = arith.constant 0 : index
    %c0_9 = arith.constant 0 : index
    %19 = vector.load %arg3[%c0_8, %c0_9] : memref<8x512xf32, #tpu.memory_space<vmem>>, vector<8x512xf32>
    tpu.vector_store %arg3[%c0_8, %c0_9], %18 {strides = array<i32>} : memref<8x512xf32, #tpu.memory_space<vmem>>, vector<8x512xf32>,
    return
  }
  func.func @transform_0(%arg0: i32) -> (i32, i32) {
    %c0_i32 = arith.constant 0 : i32
    %c0_i32_0 = arith.constant 0 : i32
    return %arg0, %c0_i32 : i32, i32
  }
  func.func @transform_1(%arg0: i32) -> (i32, i32) {
    %c0_i32 = arith.constant 0 : i32
    %c0_i32_0 = arith.constant 0 : i32
    return %arg0, %c0_i32 : i32, i32
  }
  func.func @transform_2(%arg0: i32) -> (i32, i32) {
    %c0_i32 = arith.constant 0 : i32
    %c0_i32_0 = arith.constant 0 : i32
    return %arg0, %c0_i32 : i32, i32
  }
}

</mosaic_0001>

<bundles_post_ra>
// kernel: tpu_custom_call.1
= control target key start
LH: loop header
LB: loop body
LE: loop exit
PB: predicated region body
PF: predicated region fallthrough
CT: control target
= control target key end

     0   :  { %7 = vsyncpa [#allocation3], 0  ;;  %s297_s0 = inlined_call_operand.hbm [shape: f32[4,512], index: 0, kind: input, shape index: {}]   ;;  %s298_s1 = inlined_call_operand.hbm [shape: f32[4,512], index: 1, kind: input, shape index: {}]   ;;  %s299_s2 = inlined_call_operand.hbm [shape: f32[4,512], index: 2, kind: output, shape index: {}]  }
   0x1   :  { %8 = vsyncpa [#allocation6], 0 }
   0x2   :  { %9 = vsyncpa [#allocation4], 0 }
   0x3   :  { %14 = vsyncadd [#allocation3], 256  ;;  %s237_s9 = smov [#allocation2]  }
   0x4   :  { %s15_s10 = sshll.u32 %s237_s9, 4  ;;  %s16_s10 = int_to_ptr.vmem [resolvable:$true] %s15_s10 }
   0x5   :  { %s179_s11 = scalar_lea.vmem %s16_s10, 256  ;;  %s183_s12 = scalar_lea.vmem %s16_s10, 512 }
   0x6   :  { %p180_p0 = scmp.ne.s32.totalorder %s16_s10, %s179_s11  ;;  %p184_p1 = scmp.lt.s32.totalorder %s16_s10, %s16_s10 }
   0x7   :  { %p185_p2 = scmp.lt.s32.totalorder %s183_s12, %s179_s11 }
   0x9   :  { %p186_p3 = por %p185_p2, %p184_p1 }
   0xb   :  { %p187_p4 = pnand %p186_p3, %p180_p0 }
   0xd   :  { %190 = shalt.err (!%p187_p4)
}
   0xe   :  { %s238_s13 = smov 256   ;;  %s239_s14 = smov 16  }
   0xf   :  { %21 = dma.hbm_to_vmem [thread:$0]  %s297_s0, 256, %s16_s10, [#allocation3], %s238_s13, %s238_s13, %s239_s14  }
  0x10   :  { %26 = vsyncadd [#allocation6], 256  ;;  %s240_s17 = smov [#allocation5]  }
  0x11   :  { %s27_s18 = sshll.u32 %s240_s17, 4  ;;  %s28_s18 = int_to_ptr.vmem [resolvable:$true] %s27_s18 }
  0x12   :  { %s199_s19 = scalar_lea.vmem %s28_s18, 256  ;;  %s203_s20 = scalar_lea.vmem %s28_s18, 512 }
  0x13   :  { %p200_p5 = scmp.ne.s32.totalorder %s28_s18, %s199_s19  ;;  %p204_p6 = scmp.lt.s32.totalorder %s28_s18, %s28_s18 }
  0x14   :  { %p205_p7 = scmp.lt.s32.totalorder %s203_s20, %s199_s19 }
  0x16   :  { %p206_p8 = por %p205_p7, %p204_p6 }
  0x18   :  { %p207_p9 = pnand %p206_p8, %p200_p5 }
  0x1a   :  { %210 = shalt.err (!%p207_p9)
}
  0x1b   :  { %33 = dma.hbm_to_vmem [thread:$0]  %s298_s1, 256, %s28_s18, [#allocation6], %s238_s13, %s238_s13, %s239_s14  }
  0x1c   :  { %231 = dma.done.wait [#allocation3], 512  }
  0x1d   :  { %232 = vsyncadd [#allocation3], 4294966784 }
  0x1e   :  { %233 = dma.done.wait [#allocation6], 512  }
  0x1f   :  { %234 = vsyncadd [#allocation6], 4294966784  ;;  %v44_v0 = vld [vmem:[#allocation5] sm:$0xff]  ;;  %v45_v2 = vld [vmem:[#allocation5 + $0x8] sm:$0xff] }
  0x20   :  { %v48_v1 = vmul.f32 2.0, %v44_v0  ;;  %v46_v3 = vld [vmem:[#allocation5 + $0x10] sm:$0xff]  ;;  %v40_v4 = vld [vmem:[#allocation2] sm:$0xff]  ;;  %v49_v5 = vmul.f32 2.0, %v45_v2  ;;  %v47_v7 = vld [vmem:[#allocation5 + $0x18] sm:$0xff] }
  0x21   :  { %v50_v6 = vmul.f32 2.0, %v46_v3  ;;  %v41_v9 = vld [vmem:[#allocation2 + $0x8] sm:$0xff]  ;;  %v42_v10 = vld [vmem:[#allocation2 + $0x10] sm:$0xff]  ;;  %v51_v11 = vmul.f32 2.0, %v47_v7  ;;  %v43_v14 = vld [vmem:[#allocation2 + $0x18] sm:$0xff] }
  0x22   :  { %v146_v8 = vadd.f32 -1.0, %v48_v1  ;;  %v147_v12 = vadd.f32 -1.0, %v49_v5 }
  0x23   :  { %v148_v13 = vadd.f32 -1.0, %v50_v6  ;;  %v149_v16 = vadd.f32 -1.0, %v51_v11 }
  0x24   :  { %v269_v15 = vmul.f32 %v146_v8, %v40_v4  ;;  %v271_v17 = vmul.f32 %v147_v12, %v41_v9 }
  0x25   :  { %v273_v18 = vmul.f32 %v148_v13, %v42_v10  ;;  %v276_v20 = vmul.f32 %v149_v16, %v43_v14 }
  0x26   :  { %v64_v19 = vand.u32 2147483647, %v269_v15  ;;  %v65_v21 = vand.u32 2147483647, %v271_v17  ;;  %v60_v53 = vmin.f32 %v269_v15, 0.0  ;;  %v61_v59 = vmin.f32 %v271_v17, 0.0 }
  0x27   :  { %v66_v22 = vand.u32 2147483647, %v273_v18  ;;  %v67_v24 = vand.u32 2147483647, %v276_v20  ;;  %v62_v63 = vmin.f32 %v273_v18, 0.0  ;;  %v63_v6 = vmin.f32 %v276_v20, 0.0 }
  0x28   :  { %v68_v23 = vsub.f32 0.0, %v64_v19  ;;  %v69_v25 = vsub.f32 0.0, %v65_v21 }
  0x29   :  { %v70_v26 = vsub.f32 0.0, %v66_v22  ;;  %v71_v28 = vsub.f32 0.0, %v67_v24 }
  0x2a   :  { %v72_v27 = vmul.f32 1.442695, %v68_v23  ;;  %v74_v29 = vmul.f32 1.442695, %v69_v25 }
  0x2b   :  { %v76_v30 = vmul.f32 1.442695, %v70_v26  ;;  %v78_v31 = vmul.f32 1.442695, %v71_v28 }
  0x2c   :  { %155 = vpow2.f32 %v72_v27 }
  0x2d   :  { %157 = vpow2.f32 %v74_v29 }
  0x2e   :  { %159 = vpow2.f32 %v76_v30 }
  0x2f   :  { %161 = vpow2.f32 %v78_v31 }
  0x39   :  { %v156_v32 = vpop.eup %155 }
  0x3a   :  { %v158_v33 = vpop.eup %157  ;;  %v80_v34 = vadd.f32 1.0, %v156_v32  ;;  %v83_v40 = vmul.f32 -0.5, %v156_v32  ;;  %v86_v45 = vand.u32 2147483647, %v156_v32 }
  0x3b   :  { %v160_v35 = vpop.eup %159  ;;  %v89_v36 = vadd.f32 1.0, %v158_v33  ;;  %v92_v41 = vmul.f32 -0.5, %v158_v33  ;;  %v95_v47 = vand.u32 2147483647, %v158_v33 }
  0x3c   :  { %v162_v37 = vpop.eup %161  ;;  %163 = vlog2.f32 %v80_v34  ;;  %v98_v38 = vadd.f32 1.0, %v160_v35  ;;  %v101_v42 = vmul.f32 -0.5, %v160_v35  ;;  %v84_v43 = vadd.f32 1.0, %v83_v40 }
  0x3d   :  { %165 = vlog2.f32 %v89_v36  ;;  %v107_v39 = vadd.f32 1.0, %v162_v37  ;;  %v110_v44 = vmul.f32 -0.5, %v162_v37  ;;  %v93_v46 = vadd.f32 1.0, %v92_v41 }
  0x3e   :  { %167 = vlog2.f32 %v98_v38  ;;  %v102_v48 = vadd.f32 1.0, %v101_v42  ;;  %v104_v49 = vand.u32 2147483647, %v160_v35  ;;  %v85_v50 = vmul.f32 %v156_v32, %v84_v43 }
  0x3f   :  { %169 = vlog2.f32 %v107_v39  ;;  %v111_v51 = vadd.f32 1.0, %v110_v44  ;;  %vm282_vm0 = vcmp.lt.f32.partialorder %v86_v45, 0.0004427343  ;;  %v94_v55 = vmul.f32 %v158_v33, %v93_v46 }
  0x40   :  { %v113_v56 = vand.u32 2147483647, %v162_v37  ;;  %vm96_vm1 = vcmp.lt.f32.partialorder %v95_v47, 0.0004427343  ;;  %v103_v60 = vmul.f32 %v160_v35, %v102_v48  ;;  %vm105_vm2 = vcmp.lt.f32.partialorder %v104_v49, 0.0004427343 }
  0x41   :  { %v112_v2 = vmul.f32 %v162_v37, %v111_v51 }
  0x42   :  { %vm114_vm3 = vcmp.lt.f32.partialorder %v113_v56, 0.0004427343 }
  0x49   :  { %v164_v52 = vpop.eup %163 }
  0x4a   :  { %v166_v57 = vpop.eup %165  ;;  %v82_v58 = vmul.f32 0.6931472, %v164_v52 }
  0x4b   :  { %v168_v61 = vpop.eup %167  ;;  %v91_v62 = vmul.f32 0.6931472, %v166_v57 }
  0x4c   :  { %v88_v0 = vsel %vm282_vm0, %v85_v50, %v82_v58  ;;  %v100_v1 = vmul.f32 0.6931472, %v168_v61  ;;  %v170_v3 = vpop.eup %169 }
  0x4d   :  { %v116_v4 = vsub.f32 %v60_v53, %v88_v0  ;;  %v97_v5 = vsel %vm96_vm1, %v94_v55, %v91_v62  ;;  %v109_v9 = vmul.f32 0.6931472, %v170_v3 }
  0x4e   :  { %v117_v7 = vsub.f32 %v61_v59, %v97_v5  ;;  %v106_v8 = vsel %vm105_vm2, %v103_v60, %v100_v1 }
  0x4f   :  { %v120_v10 = vmul.f32 -1.0, %v116_v4  ;;  %v118_v11 = vsub.f32 %v62_v63, %v106_v8  ;;  %v115_v13 = vsel %vm114_vm3, %v112_v2, %v109_v9 }
  0x50   :  { %v121_v12 = vmul.f32 -1.0, %v117_v7  ;;  %v119_v15 = vsub.f32 %v63_v6, %v115_v13 }
  0x51   :  { %124 = vst [vmem:[#allocation7] sm:$0xff] %v120_v10  ;;  %v122_v14 = vmul.f32 -1.0, %v118_v11 }
  0x52   :  { %125 = vst [vmem:[#allocation7 + $0x8] sm:$0xff] %v121_v12  ;;  %v123_v16 = vmul.f32 -1.0, %v119_v15 }
  0x53   :  { %126 = vst [vmem:[#allocation7 + $0x10] sm:$0xff] %v122_v14 }
  0x54   :  { %127 = vst [vmem:[#allocation7 + $0x18] sm:$0xff] %v123_v16 }
  0x55   :  { %132 = vsyncadd [#allocation4], 256  ;;  %s241_s0 = smov [#allocation7]  }
  0x56   :  { %s133_s1 = sshll.u32 %s241_s0, 4  ;;  %s134_s1 = int_to_ptr.vmem [resolvable:$true] %s133_s1 }
  0x57   :  { %s211_s23 = scalar_lea.vmem %s134_s1, 256  ;;  %s215_s24 = scalar_lea.vmem %s134_s1, 512 }
  0x58   :  { %p212_p10 = scmp.ne.s32.totalorder %s134_s1, %s211_s23  ;;  %p216_p11 = scmp.lt.s32.totalorder %s134_s1, %s134_s1 }
  0x59   :  { %p217_p12 = scmp.lt.s32.totalorder %s215_s24, %s211_s23 }
  0x5b   :  { %p218_p13 = por %p217_p12, %p216_p11 }
  0x5d   :  { %p219_p0 = pnand %p218_p13, %p212_p10 }
  0x5f   :  { %222 = shalt.err (!%p219_p0)
}
  0x60   :  { %139 = dma.vmem_to_hbm [thread:$0]  %s134_s1, 256, %s299_s2, [#allocation4], %s238_s13, %s238_s13, %s239_s14  }
  0x61   :  { %235 = dma.done.wait [#allocation4], 512  }
  0x62   :  { %236 = vsyncadd [#allocation4], 4294966784 }
  0x63   :  { %143 = vsyncpa [#allocation3], 1 }
  0x64   :  { %144 = vsyncpa [#allocation6], 1 }
  0x65   :  { %145 = vsyncpa [#allocation4], 1 }

</bundles_post_ra>
